<compile_context>
chip_gen: v7x
topology: tpu7x:2x2x1
jax: 0.10.0
libtpu: 0.0.40
codegen_flags: <defaults>
</compile_context>

<pallas_src>
import functools

import jax
import jax.numpy as jnp
from jax import lax
from jax.experimental import pallas as pl
from jax.experimental.pallas import tpu as pltpu

_EPS = 1e-8


def _round_up(x, m):
    return ((x + m - 1) // m) * m


def _vmem_params():
    """(per-kernel working-set budget, scoped vmem_limit_bytes), chip-aware."""
    cap = 64 << 20  # conservative default (v7x per-TC VMEM)
    try:
        info = pltpu.get_tpu_info()
        cap = int(getattr(info, "vmem_capacity_bytes", cap)) or cap
    except Exception:
        pass
    budget = min(16 << 20, cap // 4)
    limit = max(budget + (8 << 20), min(32 << 20, cap // 2))
    return budget, limit


def _pick_tiles(batch, dim, itemsize, vmem_budget_bytes, max_tile_b=None):
    """Choose (tile_b, sub_b): batch-tile rows and inner row sub-chunk rows."""
    d_pad = _round_up(dim, 128)                 # lanes are padded to 128
    pack = max(8, 32 // max(itemsize, 1))       # sublane pack: f32=8, bf16=16, int8=32
    padded_b = _round_up(batch, pack)

    # Inner row sub-chunk: keep ~4 f32 temporaries of (sub, d_pad) under ~2 MiB.
    sub_cap = (2 << 20) // (16 * d_pad)
    sub = max(pack, min(1024, (sub_cap // 32) * 32))
    tmp_bytes = 16 * sub * d_pad                # 4 f32 arrays of (sub, d_pad)

    # BlockSpec double-buffers both inputs: 2 inputs x 2 pipeline buffers.
    row_bytes = 4 * d_pad * itemsize
    avail = max(vmem_budget_bytes - tmp_bytes, row_bytes * pack)
    tb = avail // row_bytes
    tb = min(tb, (4 << 20) // max(d_pad * itemsize, 1))  # <= ~4 MiB per input buffer
    tb = min(tb, padded_b)                                # no point exceeding padded batch
    if max_tile_b is not None:
        tb = min(tb, _round_up(max_tile_b, pack))
    tb = max(pack, (tb // pack) * pack)

    sub = min(sub, tb)
    tb = max(sub, (tb // sub) * sub)            # inner loop covers the tile exactly
    return int(tb), int(sub)


def _cosine_loss_kernel(x_ref, y_ref, o_ref, *, batch, tile_b, sub_b):
    i = pl.program_id(0)
    n_sub = tile_b // sub_b

    def body(r, acc):
        start = pl.multiple_of(r * sub_b, sub_b)
        xs = x_ref[pl.ds(start, sub_b), :].astype(jnp.float32)
        ys = y_ref[pl.ds(start, sub_b), :].astype(jnp.float32)

        dot = jnp.sum(xs * ys, axis=1, keepdims=True)   # (sub, 1)
        xx = jnp.sum(xs * xs, axis=1, keepdims=True)
        yy = jnp.sum(ys * ys, axis=1, keepdims=True)

        # dot / max(||x||*||y||, eps)  ==  dot * rsqrt(max(xx*yy, eps^2))
        cos = dot * lax.rsqrt(jnp.maximum(xx * yy, _EPS * _EPS))

        # Mask rows of a partial last tile (and any padded garbage with them).
        row = lax.broadcasted_iota(jnp.int32, cos.shape, 0) + i * tile_b + start
        contrib = jnp.where(row < batch, 1.0 - cos, 0.0)
        return acc + jnp.sum(contrib)

    partial = lax.fori_loop(0, n_sub, body, jnp.float32(0.0), unroll=True)
    # Lane-dense per-tile partial: broadcast across the (8, 128) slab.
    o_ref[...] = jnp.broadcast_to(partial.reshape(1, 1, 1), o_ref.shape)


def cosine_similarity_loss(output1, label, *, vmem_budget_bytes=None,
                           max_tile_b=None):
    """Pallas TPU implementation of CosineSimilarityLoss.forward for (B, D) inputs."""
    assert output1.shape == label.shape and output1.ndim == 2, "expects (B, D) inputs"
    B, D = output1.shape

    budget, vmem_limit = _vmem_params()
    if vmem_budget_bytes is not None:
        budget = vmem_budget_bytes
        vmem_limit = max(vmem_limit, budget + (8 << 20))

    itemsize = max(jnp.dtype(output1.dtype).itemsize, jnp.dtype(label.dtype).itemsize)
    tb, sub = _pick_tiles(B, D, itemsize, budget, max_tile_b=max_tile_b)
    num_tiles = pl.cdiv(B, tb)
    # TODO(synk): for extremely wide embeddings (D so large that even `pack` rows
    # exceed the VMEM budget), add a second "arbitrary" grid axis over D with
    # per-row partial dot/xx/yy scratch.

    kernel = functools.partial(_cosine_loss_kernel, batch=B, tile_b=tb, sub_b=sub)

    partials = pl.pallas_call(
        kernel,
        out_shape=jax.ShapeDtypeStruct((num_tiles, 8, 128), jnp.float32),
        grid_spec=pltpu.PrefetchScalarGridSpec(
            num_scalar_prefetch=0,
            grid=(num_tiles,),
            in_specs=[
                pl.BlockSpec((tb, D), lambda i: (i, 0)),
                pl.BlockSpec((tb, D), lambda i: (i, 0)),
            ],
            out_specs=pl.BlockSpec((1, 8, 128), lambda i: (i, 0, 0)),
        ),
        compiler_params=pltpu.CompilerParams(
            dimension_semantics=("parallel",),   # no carried state -> both v7x TCs stream
            vmem_limit_bytes=vmem_limit,
        ),
    )(output1, label)

    # One partial per tile; XLA does a pairwise reduction over tiles.
    return jnp.sum(partials[:, 0, 0]) * (1.0 / B)


def _reference_loss(x, y):
    x = x.astype(jnp.float32)
    y = y.astype(jnp.float32)
    dot = jnp.sum(x * y, axis=1)
    denom = jnp.maximum(jnp.linalg.norm(x, axis=1) * jnp.linalg.norm(y, axis=1), _EPS)
    return jnp.mean(1.0 - dot / denom)


if __name__ == "__main__":
    key = jax.random.PRNGKey(0)
    k1, k2, k3, k4, k5, k6 = jax.random.split(key, 6)

    # Case 1: small (B, D) matching the training setup (dim=1 reduction).
    B, D = 8, 32
    output1 = jax.random.normal(k1, (B, D), dtype=jnp.float32)
    label = jax.random.normal(k2, (B, D), dtype=jnp.float32)
    loss = cosine_similarity_loss(output1, label)
    jax.block_until_ready(loss)
    ref = _reference_loss(output1, label)
    assert jnp.allclose(loss, ref, atol=1e-5, rtol=1e-5), (loss, ref)

    # Case 2: batch not a multiple of the sublane pack (exercises the row mask).
    B2, D2 = 10, 32
    a2 = jax.random.normal(k3, (B2, D2), dtype=jnp.float32)
    b2 = jax.random.normal(k4, (B2, D2), dtype=jnp.float32)
    loss2 = cosine_similarity_loss(a2, b2)
    jax.block_until_ready(loss2)
    ref2 = _reference_loss(a2, b2)
    assert jnp.allclose(loss2, ref2, atol=1e-5, rtol=1e-5), (loss2, ref2)

    # Case 3: multiple tiles with a partial last tile (exercises the parallel
    # per-tile-partials path and the wrapper-side reduction), small forced tile.
    B3, D3 = 40, 32
    a3 = jax.random.normal(k5, (B3, D3), dtype=jnp.float32)
    b3 = jax.random.normal(k6, (B3, D3), dtype=jnp.float32)
    loss3 = cosine_similarity_loss(a3, b3, max_tile_b=16)
    jax.block_until_ready(loss3)
    ref3 = _reference_loss(a3, b3)
    assert jnp.allclose(loss3, ref3, atol=1e-5, rtol=1e-5), (loss3, ref3)

    print("KERNEL_OK")
</pallas_src>

<mosaic_0001>
module attributes {stable_mosaic.version = 11 : i64} {
  func.func @_cosine_loss_kernel(%arg0: i32, %arg1: memref<8x32xf32, #tpu.memory_space<vmem>>, %arg2: memref<8x32xf32, #tpu.memory_space<vmem>>, %arg3: memref<1x8x128xf32, #tpu.memory_space<vmem>>) attributes {dimension_semantics = [#tpu.dimension_semantics<parallel>], iteration_bounds = array<i64: 1>, scalar_prefetch = 0 : i64, scratch_operands = 0 : i64, tpu.core_type = #tpu.core_type<tc>, window_params = [{transform_indices = @transform_0, window_bounds = array<i64: 8, 32>}, {transform_indices = @transform_1, window_bounds = array<i64: 8, 32>}, {transform_indices = @transform_2, window_bounds = array<i64: 1, 8, 128>}]} {
    %cst = arith.constant 0.000000e+00 : f32
    %c0_i32 = arith.constant 0 : i32
    %c8_i32 = arith.constant 8 : i32
    %0 = arith.muli %c0_i32, %c8_i32 : i32
    %1 = tpu.assume_multiple %0, 8 : i32
    %2 = arith.index_cast %1 : i32 to index
    %c0 = arith.constant 0 : index
    %3 = vector.load %arg1[%2, %c0] : memref<8x32xf32, #tpu.memory_space<vmem>>, vector<8x32xf32>
    %4 = arith.index_cast %1 : i32 to index
    %c0_0 = arith.constant 0 : index
    %5 = vector.load %arg2[%4, %c0_0] : memref<8x32xf32, #tpu.memory_space<vmem>>, vector<8x32xf32>
    %6 = arith.mulf %3, %5 : vector<8x32xf32>
    %cst_1 = arith.constant dense<0.000000e+00> : vector<8xf32>
    %7 = vector.multi_reduction <add>, %6, %cst_1 [1] : vector<8x32xf32> to vector<8xf32>
    %8 = vector.shape_cast %7 : vector<8xf32> to vector<8x1xf32>
    %9 = arith.mulf %3, %3 : vector<8x32xf32>
    %cst_2 = arith.constant dense<0.000000e+00> : vector<8xf32>
    %10 = vector.multi_reduction <add>, %9, %cst_2 [1] : vector<8x32xf32> to vector<8xf32>
    %11 = vector.shape_cast %10 : vector<8xf32> to vector<8x1xf32>
    %12 = arith.mulf %5, %5 : vector<8x32xf32>
    %cst_3 = arith.constant dense<0.000000e+00> : vector<8xf32>
    %13 = vector.multi_reduction <add>, %12, %cst_3 [1] : vector<8x32xf32> to vector<8xf32>
    %14 = vector.shape_cast %13 : vector<8xf32> to vector<8x1xf32>
    %15 = arith.mulf %11, %14 : vector<8x1xf32>
    %cst_4 = arith.constant 1.000000e-16 : f32
    %16 = vector.broadcast %cst_4 : f32 to vector<8x1xf32>
    %17 = arith.maximumf %15, %16 : vector<8x1xf32>
    %18 = math.rsqrt %17 : vector<8x1xf32>
    %19 = arith.mulf %8, %18 : vector<8x1xf32>
    %20 = tpu.iota {dimensions = array<i32: 0>} : vector<8x1xi32>
    %c8_i32_5 = arith.constant 8 : i32
    %21 = arith.muli %arg0, %c8_i32_5 : i32
    %22 = vector.broadcast %21 : i32 to vector<8x1xi32>
    %23 = arith.addi %20, %22 : vector<8x1xi32>
    %24 = vector.broadcast %1 : i32 to vector<8x1xi32>
    %25 = arith.addi %23, %24 : vector<8x1xi32>
    %c8_i32_6 = arith.constant 8 : i32
    %26 = vector.broadcast %c8_i32_6 : i32 to vector<8x1xi32>
    %27 = arith.cmpi slt, %25, %26 : vector<8x1xi32>
    %cst_7 = arith.constant 1.000000e+00 : f32
    %28 = vector.broadcast %cst_7 : f32 to vector<8x1xf32>
    %29 = arith.subf %28, %19 : vector<8x1xf32>
    %cst_8 = arith.constant 0.000000e+00 : f32
    %30 = vector.broadcast %cst_8 : f32 to vector<8x1xf32>
    %31 = arith.select %27, %29, %30 : vector<8x1xi1>, vector<8x1xf32>
    %32 = vector.shape_cast %31 : vector<8x1xf32> to vector<1x8x1xf32>
    %cst_9 = arith.constant dense<0.000000e+00> : vector<1xf32>
    %33 = vector.multi_reduction <add>, %32, %cst_9 [1, 2] : vector<1x8x1xf32> to vector<1xf32>
    %34 = vector.shape_cast %33 : vector<1xf32> to vector<1x1x1xf32>
    %35 = vector.extract %34[0, 0, 0] : f32 from vector<1x1x1xf32>
    %36 = arith.addf %cst, %35 : f32
    %c1_i32 = arith.constant 1 : i32
    %37 = vector.broadcast %36 : f32 to vector<1x1x1xf32>
    %38 = vector.shape_cast %37 : vector<1x1x1xf32> to vector<1x1x1xf32>
    %39 = vector.broadcast %38 : vector<1x1x1xf32> to vector<1x8x128xf32>
    %c0_10 = arith.constant 0 : index
    %c0_11 = arith.constant 0 : index
    %c0_12 = arith.constant 0 : index
    %40 = vector.load %arg3[%c0_10, %c0_11, %c0_12] : memref<1x8x128xf32, #tpu.memory_space<vmem>>, vector<1x8x128xf32>
    tpu.vector_store %arg3[%c0_10, %c0_11, %c0_12], %39 {strides = array<i32>} : memref<1x8x128xf32, #tpu.memory_space<vmem>>, vector<1x8x128xf32>,
    return
  }
  func.func @transform_0(%arg0: i32) -> (i32, i32) {
    %c0_i32 = arith.constant 0 : i32
    %c0_i32_0 = arith.constant 0 : i32
    return %arg0, %c0_i32 : i32, i32
  }
  func.func @transform_1(%arg0: i32) -> (i32, i32) {
    %c0_i32 = arith.constant 0 : i32
    %c0_i32_0 = arith.constant 0 : i32
    return %arg0, %c0_i32 : i32, i32
  }
  func.func @transform_2(%arg0: i32) -> (i32, i32, i32) {
    %c0_i32 = arith.constant 0 : i32
    %c0_i32_0 = arith.constant 0 : i32
    %c0_i32_1 = arith.constant 0 : i32
    return %arg0, %c0_i32, %c0_i32_0 : i32, i32, i32
  }
}

</mosaic_0001>

<bundles_post_ra>
// kernel: tpu_custom_call.1
= control target key start
LH: loop header
LB: loop body
LE: loop exit
PB: predicated region body
PF: predicated region fallthrough
CT: control target
= control target key end

     0   :  { %7 = vsyncpa [#allocation3], 0  ;;  %s228_s0 = inlined_call_operand.hbm [shape: f32[8,32], index: 0, kind: input, shape index: {}]   ;;  %s229_s1 = inlined_call_operand.hbm [shape: f32[8,32], index: 1, kind: input, shape index: {}]   ;;  %s230_s2 = inlined_call_operand.hbm [shape: f32[1,8,128], index: 2, kind: output, shape index: {}]  }
   0x1   :  { %8 = vsyncpa [#allocation6], 0 }
   0x2   :  { %9 = vsyncpa [#allocation4], 0  ;;  %s174_s9 = smov [#allocation2]   ;;  %s175_s11 = smov [#allocation5]  }
   0x3   :  { %s16_s10 = sshll.u32 %s174_s9, 4  ;;  %s26_s12 = sshll.u32 %s175_s11, 4  ;;  %s17_s10 = int_to_ptr.vmem [resolvable:$true] %s16_s10  ;;  %s27_s12 = int_to_ptr.vmem [resolvable:$true] %s26_s12 }
   0x4   :  { %s102_s15 = scalar_lea.hbm %s228_s0, 128 }
   0x5   :  { %p103_p0 = scmp.ne.s32.totalorder %s228_s0, %s102_s15  ;;  %p106_p1 = scmp.lt.u32.totalorder %s102_s15, %s228_s0 }
   0x7   :  { %p108_p2 = pnand %p106_p1, %p103_p0 }
   0x9   :  { %111 = shalt.err (!%p108_p2)
}
   0xa   :  { %s112_s20 = scalar_lea.vmem %s17_s10, 128  ;;  %p117_p4 = scmp.lt.s32.totalorder %s17_s10, %s17_s10 }
   0xb   :  { %p113_p3 = scmp.ne.s32.totalorder %s17_s10, %s112_s20  ;;  %p118_p5 = scmp.lt.s32.totalorder %s112_s20, %s112_s20 }
   0xd   :  { %p119_p6 = por %p118_p5, %p117_p4 }
   0xf   :  { %p120_p7 = pnand %p119_p6, %p113_p3 }
  0x11   :  { %123 = shalt.err (!%p120_p7)
}
  0x12   :  { %19 = dma.hbm_to_vmem [thread:$0]  %s228_s0, 128, %s17_s10, [#allocation3]  }
  0x13   :  { %s124_s25 = scalar_lea.hbm %s229_s1, 128 }
  0x14   :  { %p125_p8 = scmp.ne.s32.totalorder %s229_s1, %s124_s25  ;;  %p128_p9 = scmp.lt.u32.totalorder %s124_s25, %s229_s1 }
  0x16   :  { %p130_p10 = pnand %p128_p9, %p125_p8 }
  0x18   :  { %133 = shalt.err (!%p130_p10)
}
  0x19   :  { %s134_s30 = scalar_lea.vmem %s27_s12, 128  ;;  %p139_p12 = scmp.lt.s32.totalorder %s27_s12, %s27_s12 }
  0x1a   :  { %p135_p11 = scmp.ne.s32.totalorder %s27_s12, %s134_s30  ;;  %p140_p13 = scmp.lt.s32.totalorder %s134_s30, %s134_s30 }
  0x1c   :  { %p141_p0 = por %p140_p13, %p139_p12 }
  0x1e   :  { %p142_p1 = pnand %p141_p0, %p135_p11 }
  0x20   :  { %145 = shalt.err (!%p142_p1)
}
  0x21   :  { %29 = dma.hbm_to_vmem [thread:$0]  %s229_s1, 128, %s27_s12, [#allocation6]  }
  0x22   :  { %168 = dma.done.wait [#allocation3], 128  }
  0x23   :  { %169 = vsyncadd [#allocation3], 4294967168 }
  0x24   :  { %170 = dma.done.wait [#allocation6], 128  }
  0x25   :  { %171 = vsyncadd [#allocation6], 4294967168  ;;  %v36_v0 = vld [vmem:[#allocation2] sm:$0xff]  ;;  %vm39_vm0 = vcmask 261120   ;;  %v37_v1 = vld [vmem:[#allocation5] sm:$0xff]  ;;  %vm65_vm1 = vcmask 7168  }
  0x26   :  { %v43_v2 = vmul.f32 %v36_v0, %v36_v0  ;;  %v47_v3 = vmul.f32 %v37_v1, %v37_v1  ;;  %v38_v4 = vmul.f32 %v37_v1, %v36_v0  ;;  %s176_s1 = smov [#allocation7]  }
  0x27   :  { %s85_s4 = sshll.u32 %s176_s1, 4  ;;  %s86_s4 = int_to_ptr.vmem [resolvable:$true] %s85_s4 }
  0x28   :  { %v44_v5 = vsel %vm39_vm0, %v43_v2, 0.0  ;;  %v40_v6 = vsel %vm39_vm0, %v38_v4, 0.0  ;;  %v48_v7 = vsel %vm39_vm0, %v47_v3, 0.0  ;;  %s146_s6 = scalar_lea.vmem %s86_s4, 128  ;;  %p151_p3 = scmp.lt.s32.totalorder %s86_s4, %s86_s4 }
  0x29   :  { %45 = vadd.xlane.f32.xlu0 %v44_v5  ;;  %41 = vadd.xlane.f32.xlu1 %v40_v6  ;;  %p147_p2 = scmp.ne.s32.totalorder %s86_s4, %s146_s6  ;;  %p152_p4 = scmp.lt.s32.totalorder %s146_s6, %s146_s6 }
  0x2b   :  { %p153_p5 = por %p152_p4, %p151_p3 }
  0x2d   :  { %49 = vadd.xlane.f32.xlu0 %v48_v7  ;;  %p154_p6 = pnand %p153_p5, %p147_p2 }
  0xb6   :  { %v46_v8 = vpop.xlane.xlu0 %45  ;;  %v42_v12 = vpop.xlane.xlu1 %41 }
  0xba   :  { %v50_v9 = vpop.xlane.xlu0 %49 }
  0xbb   :  { %v51_v10 = vmul.f32 %v50_v9, %v46_v8 }
  0xbd   :  { %v52_v11 = vmax.f32 %v51_v10, 1e-16 }
  0xbf   :  { %100 = vrsqrt.f32 %v52_v11 }
  0xc9   :  { %v101_v13 = vpop.eup %100 }
  0xca   :  { %v54_v14 = vmul.f32 %v101_v13, %v42_v12 }
  0xcc   :  { %v63_v15 = vsub.f32 1.0, %v54_v14 }
  0xce   :  { %v66_v16 = vsel %vm65_vm1, %v63_v15, 0.0 }
  0xcf   :  { %67 = vadd.xlane.f32.xlu1 %v66_v16 }
 0x15c   :  { %v68_v17 = vpop.xlane.xlu1 %67 }
 0x15d   :  { %v69_v18 = vrot.slane %v68_v17, 4 }
 0x15f   :  { %v70_v19 = vadd.f32 %v69_v18, %v68_v17 }
 0x161   :  { %v71_v20 = vrot.slane %v70_v19, 2 }
 0x163   :  { %v72_v21 = vadd.f32 %v71_v20, %v70_v19 }
 0x165   :  { %v73_v22 = vrot.slane %v72_v21, 1 }
 0x167   :  { %v74_v23 = vadd.f32 %v73_v22, %v72_v21 }
 0x169   :  { %95 = vpush %v74_v23 }
 0x19a   :  { %s96_s5 = spop %95 }
 0x19b   :  { %v77_v24 = vstv %s96_s5 }
 0x19c   :  { %78 = vst [vmem:[#allocation7] sm:$0xff] %v77_v24 }
 0x19d   :  { %157 = shalt.err (!%p154_p6)
}
 0x19e   :  { %s158_s9 = scalar_lea.hbm %s230_s2, 128 }
 0x19f   :  { %p159_p7 = scmp.ne.s32.totalorder %s230_s2, %s158_s9  ;;  %p162_p8 = scmp.lt.u32.totalorder %s158_s9, %s230_s2 }
 0x1a1   :  { %p164_p9 = pnand %p162_p8, %p159_p7 }
 0x1a3   :  { %167 = shalt.err (!%p164_p9)
}
 0x1a4   :  { %88 = dma.vmem_to_hbm [thread:$0]  %s86_s4, 128, %s230_s2, [#allocation4]  }
 0x1a5   :  { %172 = dma.done.wait [#allocation4], 128  }
 0x1a6   :  { %173 = vsyncadd [#allocation4], 4294967168 }
 0x1a7   :  { %92 = vsyncpa [#allocation3], 1 }
 0x1a8   :  { %93 = vsyncpa [#allocation6], 1 }
 0x1a9   :  { %94 = vsyncpa [#allocation4], 1 }

</bundles_post_ra>
